<compile_context>
chip_gen: v7x
topology: tpu7x:2x2x1
jax: 0.10.0
libtpu: 0.0.40
codegen_flags: <defaults>
</compile_context>

<pallas_src>
import functools

import jax
import jax.numpy as jnp
import numpy as np
from jax.experimental import pallas as pl
from jax.experimental.pallas import tpu as pltpu


# ----------------------------- Pallas kernel -------------------------------

def _tril_mask_kernel(x_ref, o_ref, *, width, shift):
    # x_ref / o_ref: (tm, H*W).  Column c of the flattened plane maps to
    # (i, j) = (c // W, c % W); keep elements with j <= i (torch.tril, diag=0).
    # The predicate is computed on a single-row (1, H*W) iota and broadcast
    # along sublanes by the select, so the per-output-vreg cost is one select.
    hw = x_ref.shape[-1]
    col = jax.lax.broadcasted_iota(jnp.int32, (1, hw), dimension=1)
    if shift is not None:                      # width is a power of two
        i = col >> shift
        j = col & (width - 1)
    else:                                      # generic width
        i = col // width
        j = col - i * width
    keep = j <= i                              # (1, hw), broadcasts over rows
    x = x_ref[...]
    o_ref[...] = jnp.where(keep, x, jnp.zeros_like(x))


# ------------------------------- wrapper ------------------------------------

def _choose_tm(rows, hw, dtype):
    """Row-tile size: dtype-aware sublane alignment, <= 8 MiB total VMEM
    footprint (in+out, double-buffered), capped at 1024 rows, and >= 2 grid
    steps whenever rows is large enough (so v7x can use both TensorCores)."""
    itemsize = jnp.dtype(dtype).itemsize
    align = max(8, 32 // itemsize)             # 8 (f32), 16 (bf16), 32 (int8/fp8)
    if rows <= align:
        return rows                            # single block == full row extent
    row_bytes = hw * itemsize
    budget_total = 8 * 1024 * 1024             # in + out, double-buffered => /4
    max_rows_budget = max(align, budget_total // (4 * max(row_bytes, 1)))
    tm = min(1024, max_rows_budget)
    # Keep at least 2 grid steps so "parallel" can shard across v7x's 2 TCs.
    half = -(-rows // 2)
    half_aligned = ((half + align - 1) // align) * align
    tm = min(tm, half_aligned)
    tm = max(align, (tm // align) * align)     # sublane-aligned
    return tm


def diagonal_upper_split(x, *, tm=None):
    """x: (N, C, H, W). Returns x with the strictly-upper triangle of every
    (H, W) plane zeroed, i.e. x * tril(ones(H, W)) broadcast over (N, C)."""
    n, c, h, w = x.shape
    rows = n * c
    hw = h * w
    x2 = x.reshape(rows, hw)                   # free view; last dim lane-dense

    if tm is None:
        tm = _choose_tm(rows, hw, x2.dtype)

    # Static branch: shift/AND path when W is a power of two (cheap on VPU).
    shift = (w.bit_length() - 1) if (w & (w - 1)) == 0 else None

    grid = (pl.cdiv(rows, tm),)

    out = pl.pallas_call(
        functools.partial(_tril_mask_kernel, width=w, shift=shift),
        out_shape=jax.ShapeDtypeStruct((rows, hw), x2.dtype),
        grid_spec=pltpu.PrefetchScalarGridSpec(
            num_scalar_prefetch=0,
            grid=grid,
            in_specs=[pl.BlockSpec((tm, hw), lambda r: (r, 0))],
            out_specs=pl.BlockSpec((tm, hw), lambda r: (r, 0)),
        ),
        compiler_params=pltpu.CompilerParams(
            dimension_semantics=("parallel",)),
    )(x2)

    return out.reshape(n, c, h, w)


# ------------------------------ reference -----------------------------------

def _reference(x):
    n, c, h, w = x.shape
    mask = jnp.tril(jnp.ones((h, w), dtype=x.dtype), k=0)
    return x * mask[None, None, :, :]


# --------------------------------- main --------------------------------------

if __name__ == "__main__":
    key = jax.random.PRNGKey(0)

    # Main check: the module's nominal small shape.
    N, C, H, W = 2, 4, 16, 16
    x = jax.random.normal(key, (N, C, H, W), dtype=jnp.float32)
    out = jax.block_until_ready(jax.jit(diagonal_upper_split)(x))
    np.testing.assert_allclose(np.asarray(out), np.asarray(_reference(x)),
                               rtol=1e-6, atol=1e-6)

    # Ragged-grid check: rows % tm != 0 (exercises the partial last block).
    x2 = jax.random.normal(jax.random.PRNGKey(1), (3, 7, 16, 16),
                           dtype=jnp.float32)
    out2 = jax.block_until_ready(
        jax.jit(functools.partial(diagonal_upper_split, tm=8))(x2))
    np.testing.assert_allclose(np.asarray(out2), np.asarray(_reference(x2)),
                               rtol=1e-6, atol=1e-6)

    print("KERNEL_OK")
</pallas_src>

<mosaic_0001>
module attributes {stable_mosaic.version = 11 : i64} {
  func.func @_tril_mask_kernel(%arg0: i32, %arg1: memref<8x256xf32, #tpu.memory_space<vmem>>, %arg2: memref<8x256xf32, #tpu.memory_space<vmem>>) attributes {dimension_semantics = [#tpu.dimension_semantics<parallel>], iteration_bounds = array<i64: 1>, scalar_prefetch = 0 : i64, scratch_operands = 0 : i64, tpu.core_type = #tpu.core_type<tc>, window_params = [{transform_indices = @transform_0, window_bounds = array<i64: 8, 256>}, {transform_indices = @transform_1, window_bounds = array<i64: 8, 256>}]} {
    %0 = tpu.iota {dimensions = array<i32: 1>} : vector<1x256xi32>
    %c4_i32 = arith.constant 4 : i32
    %1 = vector.broadcast %c4_i32 : i32 to vector<1x256xi32>
    %2 = arith.shrsi %0, %1 : vector<1x256xi32>
    %c15_i32 = arith.constant 15 : i32
    %3 = vector.broadcast %c15_i32 : i32 to vector<1x256xi32>
    %4 = arith.andi %0, %3 : vector<1x256xi32>
    %5 = arith.cmpi sle, %4, %2 : vector<1x256xi32>
    %c0 = arith.constant 0 : index
    %c0_0 = arith.constant 0 : index
    %6 = vector.load %arg1[%c0, %c0_0] : memref<8x256xf32, #tpu.memory_space<vmem>>, vector<8x256xf32>
    %cst = arith.constant 0.000000e+00 : f32
    %7 = vector.broadcast %cst : f32 to vector<8x256xf32>
    %8 = vector.shape_cast %5 : vector<1x256xi1> to vector<1x256xi1>
    %9 = vector.broadcast %8 : vector<1x256xi1> to vector<8x256xi1>
    %10 = arith.select %9, %6, %7 : vector<8x256xi1>, vector<8x256xf32>
    %c0_1 = arith.constant 0 : index
    %c0_2 = arith.constant 0 : index
    %11 = vector.load %arg2[%c0_1, %c0_2] : memref<8x256xf32, #tpu.memory_space<vmem>>, vector<8x256xf32>
    tpu.vector_store %arg2[%c0_1, %c0_2], %10 {strides = array<i32>} : memref<8x256xf32, #tpu.memory_space<vmem>>, vector<8x256xf32>,
    return
  }
  func.func @transform_0(%arg0: i32) -> (i32, i32) {
    %c0_i32 = arith.constant 0 : i32
    %c0_i32_0 = arith.constant 0 : i32
    return %arg0, %c0_i32 : i32, i32
  }
  func.func @transform_1(%arg0: i32) -> (i32, i32) {
    %c0_i32 = arith.constant 0 : i32
    %c0_i32_0 = arith.constant 0 : i32
    return %arg0, %c0_i32 : i32, i32
  }
}

</mosaic_0001>

<bundles_post_ra>
// kernel: diagonal_upper_split.1
= control target key start
LH: loop header
LB: loop body
LE: loop exit
PB: predicated region body
PF: predicated region fallthrough
CT: control target
= control target key end

     0   :  { %v8_v0 = vlaneseq  ;;  %s53_s0 = inlined_call_operand.vmem [shape: f32[8,256], index: 0, kind: input, shape index: {}]   ;;  %s54_s1 = inlined_call_operand.vmem [shape: f32[8,256], index: 1, kind: output, shape index: {}]  }
   0x1   :  { %v17_v4 = vld [vmem:[%s53_s0] sm:$0xff]  ;;  %v18_v8 = vld [vmem:[%s53_s0 + $0x8] sm:$0xff] }
   0x2   :  { %v9_v1 = vand.u32 127, %v8_v0 }
   0x4   :  { %v11_v2 = vshra.s32 %v9_v1, 4  ;;  %v13_v3 = vand.u32 15, %v9_v1  ;;  %v10_v5 = vadd.s32 128, %v9_v1 }
   0x6   :  { %vm15_vm0 = vcmp.le.s32.totalorder %v13_v3, %v11_v2  ;;  %v12_v6 = vshra.s32 %v10_v5, 4  ;;  %v14_v7 = vand.u32 15, %v10_v5 }
   0x7   :  { %v23_v9 = vsel %vm15_vm0, %v17_v4, 0.0 }
   0x8   :  { %25 = vst [vmem:[%s54_s1] sm:$0xff] %v23_v9  ;;  %vm16_vm1 = vcmp.le.s32.totalorder %v14_v7, %v12_v6 }
   0x9   :  { %v24_v10 = vsel %vm16_vm1, %v18_v8, 0.0 }
   0xa   :  { %26 = vst [vmem:[%s54_s1 + $0x8] sm:$0xff] %v24_v10 }

</bundles_post_ra>
